<compile_context>
chip_gen: v7x
topology: tpu7x:2x2x1
jax: 0.10.0
libtpu: 0.0.40
codegen_flags: <defaults>
</compile_context>

<pallas_src>
import functools

import jax
import jax.numpy as jnp
from jax.experimental import pallas as pl
from jax.experimental.pallas import tpu as pltpu


def _round_up(n, m):
    return ((n + m - 1) // m) * m


def _mlp_kernel(*refs, num_layers):
    # refs = (x_ref, w1, b1, w2, b2, ..., wN, bN, o_ref)
    x_ref = refs[0]
    o_ref = refs[-1]
    params = refs[1:-1]

    h = x_ref[...].astype(jnp.bfloat16)          # f32 -> bf16 cast inside the kernel
    acc = None
    for l in range(num_layers):
        w = params[2 * l][...]                   # bf16 (hidden dims pre-padded)
        b = params[2 * l + 1][...]               # f32, shape (1, d_out)
        # Linear (MXU matmul, f32 accumulate) + bias + ReLU.  Dropout(p=0) == identity.
        acc = jnp.dot(h, w, preferred_element_type=jnp.float32) + b
        acc = jnp.maximum(acc, 0.0)
        if l + 1 < num_layers:
            h = acc.astype(jnp.bfloat16)         # bf16 between layers, f32 accumulation
    o_ref[...] = acc.astype(o_ref.dtype)


def prepare_params(weights, biases):
    """One-time (init-time) weight prep: cast to bf16/f32 and zero-pad the *hidden*
    dims up to multiples of 128.  in_dim and out_dim stay unpadded so x and the
    output need no padding.  weights[i]: (d_i, d_{i+1}) (transpose of nn.Linear),
    biases[i]: (d_{i+1},)."""
    num_layers = len(weights)
    dims = [weights[0].shape[0]] + [w.shape[1] for w in weights]
    dims_p = list(dims)
    for i in range(1, num_layers):               # hidden dims only
        dims_p[i] = _round_up(dims[i], 128)

    w_pad, b_pad = [], []
    for l in range(num_layers):
        w = jnp.zeros((dims_p[l], dims_p[l + 1]), jnp.bfloat16)
        w = w.at[: dims[l], : dims[l + 1]].set(weights[l].astype(jnp.bfloat16))
        b = jnp.zeros((1, dims_p[l + 1]), jnp.float32)
        b = b.at[:, : dims[l + 1]].set(biases[l].astype(jnp.float32).reshape(1, -1))
        w_pad.append(w)
        b_pad.append(b)
    return tuple(w_pad), tuple(b_pad)


def _choose_tile_b(B):
    if B <= 256:
        return B   # one full-extent block (exempt from the sublane-multiple rule)
    # >= 2 grid steps (v7x has 2 TensorCores), MXU/bf16-friendly multiple of 256,
    # capped at 2048 rows (per-step VMEM stays tiny at these widths).
    return int(min(2048, _round_up(pl.cdiv(B, 2), 256)))


def classifier_head_forward(x, w_pad, b_pad, *, tile_b=None):
    """Fused MLP forward.  x: (B, in_dim) float32; w_pad/b_pad from prepare_params.
    Returns (B, out_dim) in x.dtype."""
    B, in_dim = x.shape
    num_layers = len(w_pad)
    assert w_pad[0].shape[0] == in_dim, (w_pad[0].shape, in_dim)
    out_dim = w_pad[-1].shape[1]

    if tile_b is None:
        tile_b = _choose_tile_b(B)
    grid = (pl.cdiv(B, tile_b),)   # ragged last block; OOB rows are masked on store

    # v7x VMEM guard: default double-buffering holds the grid-resident weights
    # twice; if that plus the double-buffered x/out tiles would blow past ~half of
    # v7x's 64 MiB VMEM, single-buffer the weight blocks and raise the VMEM limit.
    weight_bytes = sum(w.size * w.dtype.itemsize + b.size * b.dtype.itemsize
                       for w, b in zip(w_pad, b_pad))
    act_bytes = 2 * tile_b * (in_dim + out_dim) * x.dtype.itemsize
    single_buffer_weights = (2 * weight_bytes + act_bytes) > (32 << 20)
    w_spec_kwargs = {"pipeline_mode": pl.Buffered(1)} if single_buffer_weights else {}

    in_specs = [pl.BlockSpec((tile_b, in_dim), lambda i: (i, 0))]
    for w, b in zip(w_pad, b_pad):
        in_specs.append(pl.BlockSpec(w.shape, lambda i: (0, 0), **w_spec_kwargs))
        in_specs.append(pl.BlockSpec(b.shape, lambda i: (0, 0), **w_spec_kwargs))
    out_spec = pl.BlockSpec((tile_b, out_dim), lambda i: (i, 0))

    cp_kwargs = dict(dimension_semantics=("parallel",))
    if single_buffer_weights:
        cp_kwargs["vmem_limit_bytes"] = int(min(weight_bytes + act_bytes + (8 << 20),
                                                64 << 20))

    kernel = functools.partial(_mlp_kernel, num_layers=num_layers)
    params_flat = [p for wb in zip(w_pad, b_pad) for p in wb]

    return pl.pallas_call(
        kernel,
        out_shape=jax.ShapeDtypeStruct((B, out_dim), x.dtype),
        grid=grid,
        in_specs=in_specs,
        out_specs=out_spec,
        compiler_params=pltpu.CompilerParams(**cp_kwargs),
    )(x, *params_flat)


def init_params(key, in_dim, out_dim, layer_dims):
    """Matches ClassifierHead's structure: dims = [in_dim] + layer_dims + [out_dim],
    one (Linear, ReLU, Dropout) block per edge; nn.Linear-style uniform init."""
    dims = [in_dim] + list(layer_dims) + [out_dim]
    weights, biases = [], []
    for i in range(1, len(dims)):
        d_in, d_out = dims[i - 1], dims[i]
        key, kw, kb = jax.random.split(key, 3)
        bound = 1.0 / float(d_in) ** 0.5
        weights.append(jax.random.uniform(kw, (d_in, d_out), jnp.float32, -bound, bound))
        biases.append(jax.random.uniform(kb, (d_out,), jnp.float32, -bound, bound))
    return weights, biases


def reference_forward_bf16(x, weights, biases):
    """Pure-JAX reference mirroring the kernel's bf16-input / f32-accumulate recipe."""
    h = x.astype(jnp.bfloat16)
    acc = None
    for w, b in zip(weights, biases):
        acc = jnp.dot(h, w.astype(jnp.bfloat16), preferred_element_type=jnp.float32)
        acc = jnp.maximum(acc + b.astype(jnp.float32).reshape(1, -1), 0.0)
        h = acc.astype(jnp.bfloat16)
    return acc.astype(x.dtype)


def reference_forward_f32(x, weights, biases):
    """Full-f32 reference (PyTorch-module-equivalent numerics)."""
    h = x
    for w, b in zip(weights, biases):
        h = jnp.maximum(h @ w + b.reshape(1, -1), 0.0)
    return h


if __name__ == "__main__":
    # Shapes consistent with the module: in_dim=32, hidden=[64, 48], out_dim=16.
    # B=384 exercises 2 "parallel" grid steps (tile_b=256) incl. a ragged last block.
    B, in_dim, out_dim = 384, 32, 16
    layer_dims = [64, 48]

    key = jax.random.PRNGKey(0)
    key, kx = jax.random.split(key)
    x = jax.random.normal(kx, (B, in_dim), jnp.float32)
    weights, biases = init_params(key, in_dim, out_dim, layer_dims)

    # One-time weight prep (init time), reused across forward calls.
    w_pad, b_pad = prepare_params(weights, biases)

    y = classifier_head_forward(x, w_pad, b_pad)
    y = jax.block_until_ready(y)
    assert y.shape == (B, out_dim), y.shape

    y_bf16 = reference_forward_bf16(x, weights, biases)
    assert jnp.allclose(y, y_bf16, atol=5e-3, rtol=5e-3), "mismatch vs bf16-recipe reference"
    y_f32 = reference_forward_f32(x, weights, biases)
    assert jnp.allclose(y, y_f32, atol=5e-2, rtol=5e-2), "mismatch vs f32 reference"

    print("KERNEL_OK")
</pallas_src>

<mosaic_0001>
module attributes {stable_mosaic.version = 11 : i64} {
  func.func @_mlp_kernel(%arg0: i32, %arg1: memref<256x32xf32, #tpu.memory_space<vmem>>, %arg2: memref<32x128xbf16, #tpu.memory_space<vmem>>, %arg3: memref<1x128xf32, #tpu.memory_space<vmem>>, %arg4: memref<128x128xbf16, #tpu.memory_space<vmem>>, %arg5: memref<1x128xf32, #tpu.memory_space<vmem>>, %arg6: memref<128x16xbf16, #tpu.memory_space<vmem>>, %arg7: memref<1x16xf32, #tpu.memory_space<vmem>>, %arg8: memref<256x16xf32, #tpu.memory_space<vmem>>) attributes {dimension_semantics = [#tpu.dimension_semantics<parallel>], iteration_bounds = array<i64: 2>, scalar_prefetch = 0 : i64, scratch_operands = 0 : i64, tpu.core_type = #tpu.core_type<tc>, window_params = [{transform_indices = @transform_0, window_bounds = array<i64: 256, 32>}, {pipeline_mode = #tpu.pipeline_mode<synchronous>, transform_indices = @transform_1, window_bounds = array<i64: 32, 128>}, {pipeline_mode = #tpu.pipeline_mode<synchronous>, transform_indices = @transform_2, window_bounds = array<i64: 1, 128>}, {pipeline_mode = #tpu.pipeline_mode<synchronous>, transform_indices = @transform_3, window_bounds = array<i64: 128, 128>}, {pipeline_mode = #tpu.pipeline_mode<synchronous>, transform_indices = @transform_4, window_bounds = array<i64: 1, 128>}, {pipeline_mode = #tpu.pipeline_mode<synchronous>, transform_indices = @transform_5, window_bounds = array<i64: 128, 16>}, {pipeline_mode = #tpu.pipeline_mode<synchronous>, transform_indices = @transform_6, window_bounds = array<i64: 1, 16>}, {transform_indices = @transform_7, window_bounds = array<i64: 256, 16>}]} {
    %c0 = arith.constant 0 : index
    %c0_0 = arith.constant 0 : index
    %0 = vector.load %arg1[%c0, %c0_0] : memref<256x32xf32, #tpu.memory_space<vmem>>, vector<256x32xf32>
    %1 = arith.truncf %0 : vector<256x32xf32> to vector<256x32xbf16>
    %c0_1 = arith.constant 0 : index
    %c0_2 = arith.constant 0 : index
    %2 = vector.load %arg2[%c0_1, %c0_2] : memref<32x128xbf16, #tpu.memory_space<vmem>>, vector<32x128xbf16>
    %c0_3 = arith.constant 0 : index
    %c0_4 = arith.constant 0 : index
    %3 = vector.load %arg3[%c0_3, %c0_4] : memref<1x128xf32, #tpu.memory_space<vmem>>, vector<1x128xf32>
    %cst = arith.constant dense<0.000000e+00> : vector<256x128xf32>
    %4 = tpu.matmul %1, %2, %cst {dimension_numbers = #tpu.dot_dimension_numbers<[1], [0], [0], [1], [0, 0, 1, 1], [], []>} : vector<256x32xbf16>, vector<32x128xbf16>, vector<256x128xf32> -> vector<256x128xf32>
    %5 = vector.broadcast %3 : vector<1x128xf32> to vector<256x128xf32>
    %6 = arith.addf %4, %5 : vector<256x128xf32>
    %cst_5 = arith.constant 0.000000e+00 : f32
    %7 = vector.broadcast %cst_5 : f32 to vector<256x128xf32>
    %8 = arith.maximumf %6, %7 : vector<256x128xf32>
    %9 = arith.truncf %8 : vector<256x128xf32> to vector<256x128xbf16>
    %c0_6 = arith.constant 0 : index
    %c0_7 = arith.constant 0 : index
    %10 = vector.load %arg4[%c0_6, %c0_7] : memref<128x128xbf16, #tpu.memory_space<vmem>>, vector<128x128xbf16>
    %c0_8 = arith.constant 0 : index
    %c0_9 = arith.constant 0 : index
    %11 = vector.load %arg5[%c0_8, %c0_9] : memref<1x128xf32, #tpu.memory_space<vmem>>, vector<1x128xf32>
    %cst_10 = arith.constant dense<0.000000e+00> : vector<256x128xf32>
    %12 = tpu.matmul %9, %10, %cst_10 {dimension_numbers = #tpu.dot_dimension_numbers<[1], [0], [0], [1], [0, 0, 1, 1], [], []>} : vector<256x128xbf16>, vector<128x128xbf16>, vector<256x128xf32> -> vector<256x128xf32>
    %13 = vector.broadcast %11 : vector<1x128xf32> to vector<256x128xf32>
    %14 = arith.addf %12, %13 : vector<256x128xf32>
    %cst_11 = arith.constant 0.000000e+00 : f32
    %15 = vector.broadcast %cst_11 : f32 to vector<256x128xf32>
    %16 = arith.maximumf %14, %15 : vector<256x128xf32>
    %17 = arith.truncf %16 : vector<256x128xf32> to vector<256x128xbf16>
    %c0_12 = arith.constant 0 : index
    %c0_13 = arith.constant 0 : index
    %18 = vector.load %arg6[%c0_12, %c0_13] : memref<128x16xbf16, #tpu.memory_space<vmem>>, vector<128x16xbf16>
    %c0_14 = arith.constant 0 : index
    %c0_15 = arith.constant 0 : index
    %19 = vector.load %arg7[%c0_14, %c0_15] : memref<1x16xf32, #tpu.memory_space<vmem>>, vector<1x16xf32>
    %cst_16 = arith.constant dense<0.000000e+00> : vector<256x16xf32>
    %20 = tpu.matmul %17, %18, %cst_16 {dimension_numbers = #tpu.dot_dimension_numbers<[1], [0], [0], [1], [0, 0, 1, 1], [], []>} : vector<256x128xbf16>, vector<128x16xbf16>, vector<256x16xf32> -> vector<256x16xf32>
    %21 = vector.broadcast %19 : vector<1x16xf32> to vector<256x16xf32>
    %22 = arith.addf %20, %21 : vector<256x16xf32>
    %cst_17 = arith.constant 0.000000e+00 : f32
    %23 = vector.broadcast %cst_17 : f32 to vector<256x16xf32>
    %24 = arith.maximumf %22, %23 : vector<256x16xf32>
    %c0_18 = arith.constant 0 : index
    %c0_19 = arith.constant 0 : index
    %25 = vector.load %arg8[%c0_18, %c0_19] : memref<256x16xf32, #tpu.memory_space<vmem>>, vector<256x16xf32>
    tpu.vector_store %arg8[%c0_18, %c0_19], %24 {strides = array<i32>} : memref<256x16xf32, #tpu.memory_space<vmem>>, vector<256x16xf32>,
    return
  }
  func.func @transform_0(%arg0: i32) -> (i32, i32) {
    %c0_i32 = arith.constant 0 : i32
    %c0_i32_0 = arith.constant 0 : i32
    return %arg0, %c0_i32 : i32, i32
  }
  func.func @transform_1(%arg0: i32) -> (i32, i32) {
    %c0_i32 = arith.constant 0 : i32
    %c0_i32_0 = arith.constant 0 : i32
    %c0_i32_1 = arith.constant 0 : i32
    return %c0_i32, %c0_i32_0 : i32, i32
  }
  func.func @transform_2(%arg0: i32) -> (i32, i32) {
    %c0_i32 = arith.constant 0 : i32
    %c0_i32_0 = arith.constant 0 : i32
    %c0_i32_1 = arith.constant 0 : i32
    return %c0_i32, %c0_i32_0 : i32, i32
  }
  func.func @transform_3(%arg0: i32) -> (i32, i32) {
    %c0_i32 = arith.constant 0 : i32
    %c0_i32_0 = arith.constant 0 : i32
    %c0_i32_1 = arith.constant 0 : i32
    return %c0_i32, %c0_i32_0 : i32, i32
  }
  func.func @transform_4(%arg0: i32) -> (i32, i32) {
    %c0_i32 = arith.constant 0 : i32
    %c0_i32_0 = arith.constant 0 : i32
    %c0_i32_1 = arith.constant 0 : i32
    return %c0_i32, %c0_i32_0 : i32, i32
  }
  func.func @transform_5(%arg0: i32) -> (i32, i32) {
    %c0_i32 = arith.constant 0 : i32
    %c0_i32_0 = arith.constant 0 : i32
    %c0_i32_1 = arith.constant 0 : i32
    return %c0_i32, %c0_i32_0 : i32, i32
  }
  func.func @transform_6(%arg0: i32) -> (i32, i32) {
    %c0_i32 = arith.constant 0 : i32
    %c0_i32_0 = arith.constant 0 : i32
    %c0_i32_1 = arith.constant 0 : i32
    return %c0_i32, %c0_i32_0 : i32, i32
  }
  func.func @transform_7(%arg0: i32) -> (i32, i32) {
    %c0_i32 = arith.constant 0 : i32
    %c0_i32_0 = arith.constant 0 : i32
    return %arg0, %c0_i32 : i32, i32
  }
}

</mosaic_0001>

<bundles_post_ra>
// kernel: tpu_custom_call.1
= control target key start
LH: loop header
LB: loop body
LE: loop exit
PB: predicated region body
PF: predicated region fallthrough
CT: control target
= control target key end

     0   :  { %s2046_s24 = smov 0   ;;  %s2048_s25 = smov 0   ;;  %s2510_s0 = inlined_call_operand.vmem [shape: f32[384,32], index: 0, kind: input, shape index: {}]   ;;  %s2511_s1 = inlined_call_operand.vmem [shape: bf16[32,128], index: 1, kind: input, shape index: {}]   ;;  %s2512_s2 = inlined_call_operand.vmem [shape: f32[1,128], index: 2, kind: input, shape index: {}]   ;;  %s2513_s3 = inlined_call_operand.vmem [shape: bf16[128,128], index: 3, kind: input, shape index: {}]   ;;  %s2514_s4 = inlined_call_operand.vmem [shape: f32[1,128], index: 4, kind: input, shape index: {}]   ;;  %s2515_s5 = inlined_call_operand.vmem [shape: bf16[128,16], index: 5, kind: input, shape index: {}]   ;;  %s2516_s6 = inlined_call_operand.vmem [shape: f32[1,16], index: 6, kind: input, shape index: {}]   ;;  %s2517_s7 = inlined_call_operand.vmem [shape: f32[384,16], index: 7, kind: output, shape index: {}]  }
   0x1   :  { %s2050_s26 = smov 0  }
   0x2 LB: > { %s2059_s27 = sadd.s32 4294967295, %s1972_s26   ;;  %s2061_s28 = sadd.s32 1, %s1972_s26   ;;  %s1972_s26 = sphi %s2050_s26, %s2526_s26   ;;  %s1968_s25 = sphi %s2048_s25, %s2525_s25   ;;  %s1964_s24 = sphi %s2046_s24, %s2524_s24  }
   0x3   : > { %s173_s29 = ssub.s32 %s1972_s26, %s2061_s28  ;;  %s176_s30 = sadd.s32 1, %s1968_s25 }
   0x4   : > { %p174_p0 = scmp.eq.s32.totalorder %s173_s29, 0  ;;  %p186_p1 = scmp.ne.s32.totalorder %s1968_s25, %s1964_s24 }
   0x5   : > { %p187_p2 = scmp.eq.s32.totalorder %s2059_s27, 1  ;;  %p1549_p3 = scmp.ge.s32.totalorder %s1972_s26, 1 }
   0x6   : > { %s2069_s8 = scalar_select %p174_p0, %s1968_s25, %s176_s30  }
   0x7   : > { %p2071_p4 = por %p187_p2, %p186_p1  ;;  %p246_p5 = scmp.lt.s32.totalorder %s1972_s26, 3 }
   0x9   : > { %p247_p6 = pnand %p1549_p3, %p246_p5 }
   0xa   : > { %v1900_v0 = vld [vmem:[%s2511_s1] sm:$0xff] (!%p247_p6)   ;;  %s2079_s12 = sshll.u32 (!%p247_p6), %s2059_s27, 5  ;;  %v1901_v1 = vld [vmem:[%s2511_s1 + $0x8] sm:$0xff] (!%p247_p6)   ;;  %vm372_vm0 = vcmask (!%p247_p6), 261120   ;;  %v1904_v29 = vld [vmem:[%s2513_s3 + $0x10] sm:$0xff] (!%p247_p6)   ;;  %s278_s26 = sand.u32 (!%p247_p6), 1, %s1964_s24  }
   0xb   : > { %250 = sbr.rel (%p247_p6) target bundleno = 802 (0x322), region = 48  ;;  %p286_p7 = scmp.lt.s32.totalorder (!%p247_p6), %s2079_s12, 47  ;;  %1676 = vmatprep.subr.bf16.mxu0 (!%p247_p6), %v1900_v0  ;;  %1808 = vmatprep.subr.bf16.mxu1 (!%p247_p6), %v1900_v0  ;;  %v1902_v2 = vld [vmem:[%s2513_s3] sm:$0xff] (!%p247_p6)   ;;  %v1903_v24 = vld [vmem:[%s2513_s3 + $0x8] sm:$0xff] (!%p247_p6)   ;;  %v1905_v38 = vld [vmem:[%s2513_s3 + $0x18] sm:$0xff] (!%p247_p6)   ;;  %vm1174_vm1 = vcmask (!%p247_p6), 130048  }
   0xc   : > { %1677 = vmatpush3.bf16.msra.mxu0 (!%p247_p6), %v1900_v0  ;;  %1810 = vmatpush3.bf16.msra.mxu1 (!%p247_p6), %v1900_v0  ;;  %v1906_v46 = vld [vmem:[%s2513_s3 + $0x20] sm:$0xff] (!%p247_p6)   ;;  %v1907_v51 = vld [vmem:[%s2513_s3 + $0x28] sm:$0xff] (!%p247_p6)   ;;  %v1908_v56 = vld [vmem:[%s2513_s3 + $0x30] sm:$0xff] (!%p247_p6)   ;;  %s1550_s10 = sshll.u32 (!%p247_p6), %s278_s26, 8 }
   0xd   : > { %1678 = vmatprep.subr.bf16.mxu0 (!%p247_p6), %v1901_v1  ;;  %1809 = vmatprep.subr.bf16.mxu1 (!%p247_p6), %v1901_v1  ;;  %v1909_v57 = vld [vmem:[%s2513_s3 + $0x38] sm:$0xff] (!%p247_p6)   ;;  %v1910_v58 = vld [vmem:[%s2515_s5] sm:$0xff] (!%p247_p6)   ;;  %v1911_v59 = vld [vmem:[%s2515_s5 + $0x8] sm:$0xff] (!%p247_p6)   ;;  %s2277_s24 = scalar_lea.vmem (!%p247_p6), [#allocation2], %s1550_s10  }
   0xe   : > { %v1912_v60 = vld [vmem:[%s2515_s5 + $0x10] sm:$0xff] (!%p247_p6)   ;;  %v1913_v61 = vld [vmem:[%s2515_s5 + $0x18] sm:$0xff] (!%p247_p6)   ;;  %v1914_v62 = vld [vmem:[%s2515_s5 + $0x20] sm:$0xff] (!%p247_p6)  }
   0xf   : > { %v1915_v63 = vld [vmem:[%s2515_s5 + $0x28] sm:$0xff] (!%p247_p6)   ;;  %v2184_v0 = vld [vmem:[%s2512_s2] ss:$0 sm:$0xff] (!%p247_p6) }
  0x10   : > { %1679 = vmatpush3.bf16.msra.mxu0 (!%p247_p6), %v1901_v1  ;;  %1811 = vmatpush3.bf16.msra.mxu1 (!%p247_p6), %v1901_v1 }
  0x11   : > { %1712 = vmatprep.subr.bf16.mxu1 (!%p247_p6), %v1902_v2  ;;  %1760 = vmatprep.subr.bf16.mxu0 (!%p247_p6), %v1910_v58 }
  0x12   : > { %s287_s15 = scalar_select %p286_p7, %s2079_s12, 47 }
  0x13   : > { %s1215_s11 = ssub.s32 (%p2071_p4), 48, %s2079_s12  ;;  %s1607_s13 = sshll.u32 (%p2071_p4), %s2059_s27, 8 }
  0x14   : > { %s1552_s18 = sshll.u32 %s287_s15, 3  ;;  %p1216_p8 = scmp.lt.s32.totalorder (%p2071_p4), %s1215_s11, 32 }
  0x15   : > { %s2092_s21 = scalar_lea.vmem %s2510_s0, %s1552_s18  ;;  %s2378_s16 = scalar_lea.vmem (%p2071_p4), %s2517_s7, %s1607_s13  }
  0x16   : > { %v301_v3 = vld [vmem:[%s2092_s21] sm:$0xff]  ;;  %v302_v4 = vld [vmem:[%s2092_s21 + $0x8] sm:$0xff]  ;;  %v303_v5 = vld [vmem:[%s2092_s21 + $0x10] sm:$0xff] }
  0x17   : > { %v333_v6 = vpack.c.bf16 %v302_v4, %v301_v3  ;;  %v304_v7 = vld [vmem:[%s2092_s21 + $0x18] sm:$0xff]  ;;  %v305_v8 = vld [vmem:[%s2092_s21 + $0x20] sm:$0xff]  ;;  %v306_v9 = vld [vmem:[%s2092_s21 + $0x28] sm:$0xff] }
  0x18   : > { %v334_v10 = vpack.c.bf16 %v304_v7, %v303_v5  ;;  %v335_v11 = vpack.c.bf16 %v306_v9, %v305_v8  ;;  %v307_v12 = vld [vmem:[%s2092_s21 + $0x30] sm:$0xff]  ;;  %v308_v13 = vld [vmem:[%s2092_s21 + $0x38] sm:$0xff]  ;;  %v309_v14 = vld [vmem:[%s2092_s21 + $0x40] sm:$0xff] }
  0x19   : > { %1680 = vmatprep.mubr.msk.bf16.mxu0 %vm372_vm0, %v333_v6  ;;  %v310_v15 = vld [vmem:[%s2092_s21 + $0x48] sm:$0xff]  ;;  %v317_v16 = vld [vmem:[%s2092_s21 + $0x80] sm:$0xff]  ;;  %v319_v19 = vld [vmem:[%s2092_s21 + $0x90] sm:$0xff]  ;;  %v336_v25 = vpack.c.bf16 %v308_v13, %v307_v12 }
  0x1a   : > { %1681 = vmatmul.mubr.msk.bf16.vlgmr.msra.gmra.mrb[0].mxu0 %vm372_vm0, %v334_v10  ;;  %v318_v17 = vld [vmem:[%s2092_s21 + $0x88] sm:$0xff]  ;;  %v320_v20 = vld [vmem:[%s2092_s21 + $0x98] sm:$0xff]  ;;  %v321_v21 = vld [vmem:[%s2092_s21 + $0xa0] sm:$0xff]  ;;  %v337_v27 = vpack.c.bf16 %v310_v15, %v309_v14 }
  0x1b   : > { %1684 = vmatprep.mubr.msk.bf16.mxu0 %vm372_vm0, %v335_v11  ;;  %v341_v18 = vpack.c.bf16 %v318_v17, %v317_v16  ;;  %v342_v22 = vpack.c.bf16 %v320_v20, %v319_v19  ;;  %v322_v23 = vld [vmem:[%s2092_s21 + $0xa8] sm:$0xff]  ;;  %v323_v28 = vld [vmem:[%s2092_s21 + $0xb0] sm:$0xff]  ;;  %v324_v30 = vld [vmem:[%s2092_s21 + $0xb8] sm:$0xff]  ;;  %1761 = vmatpush3.bf16.msra.mxu0 %v1910_v58 }
  0x1c   : > { %v343_v26 = vpack.c.bf16 %v322_v23, %v321_v21  ;;  %v325_v31 = vld [vmem:[%s2092_s21 + $0xc0] sm:$0xff]  ;;  %v311_v32 = vld [vmem:[%s2092_s21 + $0x50] sm:$0xff]  ;;  %v312_v33 = vld [vmem:[%s2092_s21 + $0x58] sm:$0xff]  ;;  %v344_v37 = vpack.c.bf16 %v324_v30, %v323_v28  ;;  %1762 = vmatprep.subr.bf16.mxu0 %v1911_v59 }
  0x1d   : > { %1696 = vmatprep.mubr.msk.bf16.mxu1 %vm372_vm0, %v341_v18  ;;  %v326_v34 = vld [vmem:[%s2092_s21 + $0xc8] sm:$0xff]  ;;  %v313_v35 = vld [vmem:[%s2092_s21 + $0x60] sm:$0xff]  ;;  %v338_v40 = vpack.c.bf16 %v312_v33, %v311_v32  ;;  %v327_v42 = vld [vmem:[%s2092_s21 + $0xd0] sm:$0xff] }
  0x1e   : > { %1697 = vmatmul.mubr.msk.bf16.vlgmr.msra.gmra.mrb[0].mxu1 %vm372_vm0, %v342_v22  ;;  %v314_v36 = vld [vmem:[%s2092_s21 + $0x68] sm:$0xff]  ;;  %v345_v39 = vpack.c.bf16 %v326_v34, %v325_v31  ;;  %v328_v43 = vld [vmem:[%s2092_s21 + $0xd8] sm:$0xff]  ;;  %v329_v44 = vld [vmem:[%s2092_s21 + $0xe0] sm:$0xff] }
  0x1f   : > { %1700 = vmatprep.mubr.msk.bf16.mxu1 %vm372_vm0, %v343_v26  ;;  %1713 = vmatpush3.bf16.msra.mxu1 %v1902_v2  ;;  %v339_v41 = vpack.c.bf16 %v314_v36, %v313_v35  ;;  %v330_v45 = vld [vmem:[%s2092_s21 + $0xe8] sm:$0xff]  ;;  %v315_v47 = vld [vmem:[%s2092_s21 + $0x70] sm:$0xff]  ;;  %v316_v48 = vld [vmem:[%s2092_s21 + $0x78] sm:$0xff]  ;;  %v346_v49 = vpack.c.bf16 %v328_v43, %v327_v42 }
  0x20   : > { %1714 = vmatprep.subr.bf16.mxu1 %v1903_v24  ;;  %v347_v50 = vpack.c.bf16 %v330_v45, %v329_v44  ;;  %v340_v52 = vpack.c.bf16 %v316_v48, %v315_v47  ;;  %v331_v53 = vld [vmem:[%s2092_s21 + $0xf0] sm:$0xff]  ;;  %v332_v54 = vld [vmem:[%s2092_s21 + $0xf8] sm:$0xff]  ;;  %1763 = vmatpush3.bf16.msra.mxu0 %v1911_v59 }
  0x21   : > { %v348_v55 = vpack.c.bf16 %v332_v54, %v331_v53  ;;  %1764 = vmatprep.subr.bf16.mxu0 %v1912_v60 }
  0x22   : > { %1685 = vmatmul.mubr.msk.bf16.gmra.mrb[4].mxu0 %vm372_vm0, %v336_v25 }
  0x23   : > { %1688 = vmatprep.mubr.msk.bf16.mxu0 %vm372_vm0, %v337_v27  ;;  %1715 = vmatpush3.bf16.msra.mxu1 %v1903_v24 }
  0x24   : > { %1716 = vmatprep.subr.bf16.mxu1 %v1904_v29  ;;  %1765 = vmatpush3.bf16.msra.mxu0 %v1912_v60 }
  0x25   : > { %1766 = vmatprep.subr.bf16.mxu0 %v1913_v61 }
  0x26   : > { %1701 = vmatmul.mubr.msk.bf16.gmra.mrb[4].mxu1 %vm372_vm0, %v344_v37 }
  0x27   : > { %1704 = vmatprep.mubr.msk.bf16.mxu1 %vm372_vm0, %v345_v39  ;;  %1717 = vmatpush3.bf16.msra.mxu1 %v1904_v29 }
  0x28   : > { %1718 = vmatprep.subr.bf16.mxu1 %v1905_v38  ;;  %1767 = vmatpush3.bf16.msra.mxu0 %v1913_v61 }
  0x29   : > { %1768 = vmatprep.subr.bf16.mxu0 %v1914_v62 }
  0x2a   : > { %1689 = vmatmul.mubr.msk.bf16.gmra.mrb[8].mxu0 %vm372_vm0, %v338_v40 }
  0x2b   : > { %1692 = vmatprep.mubr.msk.bf16.mxu0 %vm372_vm0, %v339_v41  ;;  %1719 = vmatpush3.bf16.msra.mxu1 %v1905_v38 }
  0x2c   : > { %1720 = vmatprep.subr.bf16.mxu1 %v1906_v46  ;;  %1769 = vmatpush3.bf16.msra.mxu0 %v1914_v62 }
  0x2d   : > { %1770 = vmatprep.subr.bf16.mxu0 %v1915_v63 }
  0x2e   : > { %1705 = vmatmul.mubr.msk.bf16.gmra.mrb[8].mxu1 %vm372_vm0, %v346_v49 }
  0x2f   : > { %1708 = vmatprep.mubr.msk.bf16.mxu1 %vm372_vm0, %v347_v50  ;;  %1721 = vmatpush3.bf16.msra.mxu1 %v1906_v46 }
  0x30   : > { %1722 = vmatprep.subr.bf16.mxu1 %v1907_v51  ;;  %1771 = vmatpush3.bf16.msra.mxu0 %v1915_v63 }
  0x32   : > { %1693 = vmatmul.mubr.msk.bf16.gmra.mrb[12].mxu0 %vm372_vm0, %v340_v52 }
  0x33   : > { %1723 = vmatpush3.bf16.msra.mxu1 %v1907_v51 }
  0x34   : > { %1724 = vmatprep.subr.bf16.mxu1 %v1908_v56 }
  0x36   : > { %1709 = vmatmul.mubr.msk.bf16.gmra.mrb[12].mxu1 %vm372_vm0, %v348_v55 }
  0x37   : > { %1725 = vmatpush3.bf16.msra.mxu1 %v1908_v56 }
  0x38   : > { %1726 = vmatprep.subr.bf16.mxu1 %v1909_v57 }
  0x3b   : > { %1727 = vmatpush3.bf16.msra.mxu1 %v1909_v57 }
  0xed   : > { %v1682_v1 = vpop.f32.mrb[0].mxu0 }
  0xee   : > { %v464_v2 = vadd.f32 %v1682_v1, %v2184_v0  ;;  %v455_v3 = vpop.f32.mrb[1].mxu0 }
  0xef   : > { %v456_v4 = vadd.f32 %v2184_v0, %v455_v3  ;;  %v1683_v5 = vpop.f32.mrb[2].mxu0 }
  0xf0   : > { %v467_v6 = vadd.f32 %v1683_v5, %v2184_v0  ;;  %v458_v7 = vpop.f32.mrb[3].mxu0  ;;  %v584_v9 = vmax.f32 %v464_v2, 0.0 }
  0xf1   : > { %v459_v8 = vadd.f32 %v2184_v0, %v458_v7  ;;  %v1698_v11 = vpop.f32.mrb[0].mxu1  ;;  %v582_v12 = vmax.f32 %v456_v4, 0.0 }
  0xf2   : > { %v585_v10 = vmax.f32 %v467_v6, 0.0  ;;  %v528_v14 = vadd.f32 %v1698_v11, %v2184_v0  ;;  %v519_v15 = vpop.f32.mrb[1].mxu1 }
  0xf3   : > { %v583_v13 = vmax.f32 %v459_v8, 0.0  ;;  %v520_v17 = vadd.f32 %v2184_v0, %v519_v15  ;;  %v1699_v18 = vpop.f32.mrb[2].mxu1 }
  0xf4   : > { %v615_v16 = vpack.c.bf16 %v585_v10, %v584_v9  ;;  %v600_v21 = vmax.f32 %v528_v14, 0.0  ;;  %v531_v22 = vadd.f32 %v1699_v18, %v2184_v0  ;;  %v522_v23 = vpop.f32.mrb[3].mxu1 }
  0xf5   : > { %v614_v19 = vpack.c.bf16 %v583_v13, %v582_v12  ;;  %v1686_v20 = vpop.f32.mrb[4].mxu0  ;;  %v598_v26 = vmax.f32 %v520_v17, 0.0  ;;  %v523_v27 = vadd.f32 %v2184_v0, %v522_v23 }
  0xf6   : > { %v480_v24 = vadd.f32 %v1686_v20, %v2184_v0  ;;  %v471_v25 = vpop.f32.mrb[5].mxu0  ;;  %v601_v30 = vmax.f32 %v531_v22, 0.0 }
  0xf7   : > { %v472_v28 = vadd.f32 %v2184_v0, %v471_v25  ;;  %v1687_v29 = vpop.f32.mrb[6].mxu0  ;;  %1728 = vmatprep.mubr.bf16.mxu1 %v614_v19  ;;  %v599_v33 = vmax.f32 %v523_v27, 0.0 }
  0xf8   : > { %v483_v31 = vadd.f32 %v1687_v29, %v2184_v0  ;;  %v474_v32 = vpop.f32.mrb[7].mxu0  ;;  %1729 = vmatmul.mubr.bf16.vlgmr.msra.gmra.mrb[16].mxu1 %v615_v16  ;;  %v2198_v35 = vpack.c.bf16 %v601_v30, %v600_v21  ;;  %v588_v36 = vmax.f32 %v480_v24, 0.0 }
  0xf9   : > { %v475_v34 = vadd.f32 %v2184_v0, %v474_v32  ;;  %v2200_v38 = vpack.c.bf16 %v599_v33, %v598_v26  ;;  %v1702_v39 = vpop.f32.mrb[4].mxu1  ;;  %v586_v40 = vmax.f32 %v472_v28, 0.0 }
  0xfa   : > { %v589_v37 = vmax.f32 %v483_v31, 0.0  ;;  %v544_v42 = vadd.f32 %v1702_v39, %v2184_v0  ;;  %v535_v43 = vpop.f32.mrb[5].mxu1 }
  0xfb   : > { %v587_v41 = vmax.f32 %v475_v34, 0.0  ;;  %v536_v45 = vadd.f32 %v2184_v0, %v535_v43  ;;  %v1703_v46 = vpop.f32.mrb[6].mxu1 }
  0xfc   : > { %v617_v44 = vpack.c.bf16 %v589_v37, %v588_v36  ;;  %v604_v49 = vmax.f32 %v544_v42, 0.0  ;;  %v547_v50 = vadd.f32 %v1703_v46, %v2184_v0  ;;  %v538_v51 = vpop.f32.mrb[7].mxu1 }
  0xfd   : > { %v616_v47 = vpack.c.bf16 %v587_v41, %v586_v40  ;;  %v1690_v48 = vpop.f32.mrb[8].mxu0  ;;  %v602_v54 = vmax.f32 %v536_v45, 0.0  ;;  %v539_v55 = vadd.f32 %v2184_v0, %v538_v51 }
  0xfe   : > { %v496_v52 = vadd.f32 %v1690_v48, %v2184_v0  ;;  %v487_v53 = vpop.f32.mrb[9].mxu0  ;;  %v605_v58 = vmax.f32 %v547_v50, 0.0 }
  0xff   : > { %v488_v56 = vadd.f32 %v2184_v0, %v487_v53  ;;  %v1691_v57 = vpop.f32.mrb[10].mxu0  ;;  %1732 = vmatprep.mubr.bf16.mxu1 %v616_v47  ;;  %v603_v61 = vmax.f32 %v539_v55, 0.0 }
 0x100   : > { %v499_v59 = vadd.f32 %v1691_v57, %v2184_v0  ;;  %v490_v60 = vpop.f32.mrb[11].mxu0  ;;  %1733 = vmatmul.mubr.bf16.gmra.mrb[20].mxu1 %v617_v44  ;;  %v625_v63 = vpack.c.bf16 %v605_v58, %v604_v49  ;;  %v592_v1 = vmax.f32 %v496_v52, 0.0 }
 0x101   : > { %v491_v62 = vadd.f32 %v2184_v0, %v490_v60  ;;  %v624_v3 = vpack.c.bf16 %v603_v61, %v602_v54  ;;  %v1706_v4 = vpop.f32.mrb[8].mxu1  ;;  %v590_v5 = vmax.f32 %v488_v56, 0.0 }
 0x102   : > { %v593_v2 = vmax.f32 %v499_v59, 0.0  ;;  %v560_v7 = vadd.f32 %v1706_v4, %v2184_v0  ;;  %v551_v8 = vpop.f32.mrb[9].mxu1 }
 0x103   : > { %v591_v6 = vmax.f32 %v491_v62, 0.0  ;;  %v552_v10 = vadd.f32 %v2184_v0, %v551_v8  ;;  %v1707_v11 = vpop.f32.mrb[10].mxu1 }
 0x104   : > { %v619_v9 = vpack.c.bf16 %v593_v2, %v592_v1  ;;  %v608_v14 = vmax.f32 %v560_v7, 0.0  ;;  %v563_v15 = vadd.f32 %v1707_v11, %v2184_v0  ;;  %v554_v16 = vpop.f32.mrb[11].mxu1 }
 0x105   : > { %v618_v12 = vpack.c.bf16 %v591_v6, %v590_v5  ;;  %v1694_v13 = vpop.f32.mrb[12].mxu0  ;;  %v606_v19 = vmax.f32 %v552_v10, 0.0  ;;  %v555_v20 = vadd.f32 %v2184_v0, %v554_v16 }
 0x106   : > { %v512_v17 = vadd.f32 %v1694_v13, %v2184_v0  ;;  %v503_v18 = vpop.f32.mrb[13].mxu0  ;;  %v609_v23 = vmax.f32 %v563_v15, 0.0 }
 0x107   : > { %v504_v21 = vadd.f32 %v2184_v0, %v503_v18  ;;  %v1695_v22 = vpop.f32.mrb[14].mxu0  ;;  %1736 = vmatprep.mubr.bf16.mxu1 %v618_v12  ;;  %v607_v26 = vmax.f32 %v555_v20, 0.0 }
 0x108   : > { %v515_v24 = vadd.f32 %v1695_v22, %v2184_v0  ;;  %v506_v25 = vpop.f32.mrb[15].mxu0  ;;  %1737 = vmatmul.mubr.bf16.gmra.mrb[24].mxu1 %v619_v9  ;;  %v627_v28 = vpack.c.bf16 %v609_v23, %v608_v14  ;;  %v596_v29 = vmax.f32 %v512_v17, 0.0 }
 0x109   : > { %v507_v27 = vadd.f32 %v2184_v0, %v506_v25  ;;  %v626_v31 = vpack.c.bf16 %v607_v26, %v606_v19  ;;  %v1710_v32 = vpop.f32.mrb[12].mxu1  ;;  %v594_v33 = vmax.f32 %v504_v21, 0.0 }
 0x10a   : > { %v597_v30 = vmax.f32 %v515_v24, 0.0  ;;  %v576_v36 = vadd.f32 %v1710_v32, %v2184_v0  ;;  %v567_v37 = vpop.f32.mrb[13].mxu1 }
 0x10b   : > { %v595_v34 = vmax.f32 %v507_v27, 0.0  ;;  %v568_v40 = vadd.f32 %v2184_v0, %v567_v37  ;;  %v1711_v41 = vpop.f32.mrb[14].mxu1 }
 0x10c   : > { %v621_v39 = vpack.c.bf16 %v597_v30, %v596_v29  ;;  %v612_v43 = vmax.f32 %v576_v36, 0.0  ;;  %v579_v44 = vadd.f32 %v1711_v41, %v2184_v0  ;;  %v570_v45 = vpop.f32.mrb[15].mxu1 }
 0x10d   : > { %v620_v42 = vpack.c.bf16 %v595_v34, %v594_v33  ;;  %v610_v46 = vmax.f32 %v568_v40, 0.0  ;;  %v571_v47 = vadd.f32 %v2184_v0, %v570_v45  ;;  %v1916_v0 = vld [vmem:[%s2515_s5 + $0x30] sm:$0xff]  }
 0x10e   : > { %v613_v48 = vmax.f32 %v579_v44, 0.0  ;;  %1772 = vmatprep.subr.bf16.mxu0 %v1916_v0 }
 0x10f   : > { %1740 = vmatprep.mubr.bf16.mxu1 %v620_v42  ;;  %v611_v49 = vmax.f32 %v571_v47, 0.0  ;;  %1773 = vmatpush3.bf16.msra.mxu0 %v1916_v0 }
 0x110   : > { %1741 = vmatmul.mubr.bf16.gmra.mrb[28].mxu1 %v621_v39  ;;  %v629_v50 = vpack.c.bf16 %v613_v48, %v612_v43 }
 0x111   : > { %1744 = vmatprep.mubr.bf16.mxu1 %v2200_v38  ;;  %v628_v51 = vpack.c.bf16 %v611_v49, %v610_v46  ;;  %v1917_v38 = vld [vmem:[%s2515_s5 + $0x38] sm:$0xff]  }
 0x112   : > { %1774 = vmatprep.subr.bf16.mxu0 %v1917_v38 }
 0x113   : > { %1775 = vmatpush3.bf16.msra.mxu0 %v1917_v38 }
 0x118   : > { %1745 = vmatmul.mubr.bf16.gmra.mrb[32].mxu1 %v2198_v35  ;;  %v2233_v35 = vld [vmem:[%s2514_s4] ss:$0 sm:$0xff] }
 0x119   : > { %1748 = vmatprep.mubr.bf16.mxu1 %v624_v3 }
 0x120   : > { %1749 = vmatmul.mubr.bf16.gmra.mrb[36].mxu1 %v625_v63 }
 0x121   : > { %1752 = vmatprep.mubr.bf16.mxu1 %v626_v31 }
 0x128   : > { %1753 = vmatmul.mubr.bf16.gmra.mrb[40].mxu1 %v627_v28 }
 0x129   : > { %1756 = vmatprep.mubr.bf16.mxu1 %v628_v51 }
 0x130   : > { %1757 = vmatmul.mubr.bf16.gmra.mrb[44].mxu1 %v629_v50 }
 0x1cb   : > { %v1730_v52 = vpop.f32.mrb[16].mxu1 }
 0x1cc   : > { %v744_v53 = vadd.f32 %v1730_v52, %v2233_v35  ;;  %v735_v54 = vpop.f32.mrb[17].mxu1 }
 0x1cd   : > { %v736_v55 = vadd.f32 %v2233_v35, %v735_v54  ;;  %v1731_v56 = vpop.f32.mrb[18].mxu1 }
 0x1ce   : > { %v747_v57 = vadd.f32 %v1731_v56, %v2233_v35  ;;  %v738_v58 = vpop.f32.mrb[19].mxu1  ;;  %v864_v60 = vmax.f32 %v744_v53, 0.0 }
 0x1cf   : > { %v739_v59 = vadd.f32 %v2233_v35, %v738_v58  ;;  %v862_v62 = vmax.f32 %v736_v55, 0.0 }
 0x1d0   : > { %v865_v61 = vmax.f32 %v747_v57, 0.0 }
 0x1d1   : > { %v863_v63 = vmax.f32 %v739_v59, 0.0 }
 0x1d2   : > { %v895_v1 = vpack.c.bf16 %v865_v61, %v864_v60 }
 0x1d3   : > { %v894_v2 = vpack.c.bf16 %v863_v63, %v862_v62  ;;  %v1734_v3 = vpop.f32.mrb[20].mxu1 }
 0x1d4   : > { %v760_v4 = vadd.f32 %v1734_v3, %v2233_v35  ;;  %v751_v5 = vpop.f32.mrb[21].mxu1 }
 0x1d5   : > { %v752_v6 = vadd.f32 %v2233_v35, %v751_v5  ;;  %v1735_v7 = vpop.f32.mrb[22].mxu1  ;;  %1776 = vmatprep.mubr.bf16.mxu0 %v894_v2 }
 0x1d6   : > { %v763_v8 = vadd.f32 %v1735_v7, %v2233_v35  ;;  %v754_v9 = vpop.f32.mrb[23].mxu1  ;;  %1777 = vmatmul.mubr.bf16.vlgmr.msra.gmra.mrb[16].mxu0 %v895_v1  ;;  %v868_v11 = vmax.f32 %v760_v4, 0.0 }
 0x1d7   : > { %v755_v10 = vadd.f32 %v2233_v35, %v754_v9  ;;  %v866_v13 = vmax.f32 %v752_v6, 0.0 }
 0x1d8   : > { %v869_v12 = vmax.f32 %v763_v8, 0.0 }
 0x1d9   : > { %v867_v14 = vmax.f32 %v755_v10, 0.0 }
 0x1da   : > { %v897_v15 = vpack.c.bf16 %v869_v12, %v868_v11 }
 0x1db   : > { %v896_v16 = vpack.c.bf16 %v867_v14, %v866_v13  ;;  %v1738_v17 = vpop.f32.mrb[24].mxu1 }
 0x1dc   : > { %v776_v18 = vadd.f32 %v1738_v17, %v2233_v35  ;;  %v767_v19 = vpop.f32.mrb[25].mxu1 }
 0x1dd   : > { %v768_v20 = vadd.f32 %v2233_v35, %v767_v19  ;;  %v1739_v21 = vpop.f32.mrb[26].mxu1  ;;  %1780 = vmatprep.mubr.bf16.mxu0 %v896_v16 }
 0x1de   : > { %v779_v22 = vadd.f32 %v1739_v21, %v2233_v35  ;;  %v770_v23 = vpop.f32.mrb[27].mxu1  ;;  %1781 = vmatmul.mubr.bf16.gmra.mrb[20].mxu0 %v897_v15  ;;  %v872_v25 = vmax.f32 %v776_v18, 0.0 }
 0x1df   : > { %v771_v24 = vadd.f32 %v2233_v35, %v770_v23  ;;  %v870_v27 = vmax.f32 %v768_v20, 0.0 }
 0x1e0   : > { %v873_v26 = vmax.f32 %v779_v22, 0.0 }
 0x1e1   : > { %v871_v28 = vmax.f32 %v771_v24, 0.0 }
 0x1e2   : > { %v899_v29 = vpack.c.bf16 %v873_v26, %v872_v25 }
 0x1e3   : > { %v898_v30 = vpack.c.bf16 %v871_v28, %v870_v27  ;;  %v1742_v31 = vpop.f32.mrb[28].mxu1 }
 0x1e4   : > { %v792_v32 = vadd.f32 %v1742_v31, %v2233_v35  ;;  %v783_v33 = vpop.f32.mrb[29].mxu1 }
 0x1e5   : > { %v784_v34 = vadd.f32 %v2233_v35, %v783_v33  ;;  %v1743_v36 = vpop.f32.mrb[30].mxu1  ;;  %1784 = vmatprep.mubr.bf16.mxu0 %v898_v30 }
 0x1e6   : > { %v795_v37 = vadd.f32 %v1743_v36, %v2233_v35  ;;  %v786_v39 = vpop.f32.mrb[31].mxu1  ;;  %1785 = vmatmul.mubr.bf16.gmra.mrb[24].mxu0 %v899_v29  ;;  %v876_v41 = vmax.f32 %v792_v32, 0.0 }
 0x1e7   : > { %v787_v40 = vadd.f32 %v2233_v35, %v786_v39  ;;  %v874_v43 = vmax.f32 %v784_v34, 0.0 }
 0x1e8   : > { %v877_v42 = vmax.f32 %v795_v37, 0.0 }
 0x1e9   : > { %v875_v44 = vmax.f32 %v787_v40, 0.0  ;;  %v2271_v40 = vld [vmem:[%s2516_s6] ss:$0 sm:$0xff] }
 0x1ea   : > { %v901_v45 = vpack.c.bf16 %v877_v42, %v876_v41 }
 0x1eb   : > { %v900_v46 = vpack.c.bf16 %v875_v44, %v874_v43  ;;  %v1746_v47 = vpop.f32.mrb[32].mxu1 }
 0x1ec   : > { %v808_v48 = vadd.f32 %v1746_v47, %v2233_v35  ;;  %v799_v49 = vpop.f32.mrb[33].mxu1 }
 0x1ed   : > { %v800_v50 = vadd.f32 %v2233_v35, %v799_v49  ;;  %v1747_v51 = vpop.f32.mrb[34].mxu1  ;;  %1788 = vmatprep.mubr.bf16.mxu0 %v900_v46 }
 0x1ee   : > { %v811_v0 = vadd.f32 %v1747_v51, %v2233_v35  ;;  %v802_v38 = vpop.f32.mrb[35].mxu1  ;;  %1789 = vmatmul.mubr.bf16.gmra.mrb[28].mxu0 %v901_v45  ;;  %v880_v53 = vmax.f32 %v808_v48, 0.0 }
 0x1ef   : > { %v803_v52 = vadd.f32 %v2233_v35, %v802_v38  ;;  %v878_v55 = vmax.f32 %v800_v50, 0.0 }
 0x1f0   : > { %v881_v54 = vmax.f32 %v811_v0, 0.0 }
 0x1f1   : > { %v879_v56 = vmax.f32 %v803_v52, 0.0 }
 0x1f2   : > { %v903_v57 = vpack.c.bf16 %v881_v54, %v880_v53 }
 0x1f3   : > { %v902_v58 = vpack.c.bf16 %v879_v56, %v878_v55  ;;  %v1750_v59 = vpop.f32.mrb[36].mxu1 }
 0x1f4   : > { %v824_v60 = vadd.f32 %v1750_v59, %v2233_v35  ;;  %v815_v61 = vpop.f32.mrb[37].mxu1 }
 0x1f5   : > { %v816_v62 = vadd.f32 %v2233_v35, %v815_v61  ;;  %v1751_v63 = vpop.f32.mrb[38].mxu1  ;;  %1792 = vmatprep.mubr.bf16.mxu0 %v902_v58 }
 0x1f6   : > { %v827_v1 = vadd.f32 %v1751_v63, %v2233_v35  ;;  %v818_v2 = vpop.f32.mrb[39].mxu1  ;;  %1793 = vmatmul.mubr.bf16.gmra.mrb[32].mxu0 %v903_v57  ;;  %v884_v4 = vmax.f32 %v824_v60, 0.0 }
 0x1f7   : > { %v819_v3 = vadd.f32 %v2233_v35, %v818_v2  ;;  %v882_v6 = vmax.f32 %v816_v62, 0.0 }
 0x1f8   : > { %v885_v5 = vmax.f32 %v827_v1, 0.0 }
 0x1f9   : > { %v883_v7 = vmax.f32 %v819_v3, 0.0 }
 0x1fa   : > { %v905_v8 = vpack.c.bf16 %v885_v5, %v884_v4 }
 0x1fb   : > { %v904_v9 = vpack.c.bf16 %v883_v7, %v882_v6  ;;  %v1754_v10 = vpop.f32.mrb[40].mxu1 }
 0x1fc   : > { %v840_v11 = vadd.f32 %v1754_v10, %v2233_v35  ;;  %v831_v12 = vpop.f32.mrb[41].mxu1 }
 0x1fd   : > { %v832_v13 = vadd.f32 %v2233_v35, %v831_v12  ;;  %v1755_v14 = vpop.f32.mrb[42].mxu1  ;;  %1796 = vmatprep.mubr.bf16.mxu0 %v904_v9 }
 0x1fe   : > { %v843_v15 = vadd.f32 %v1755_v14, %v2233_v35  ;;  %v834_v16 = vpop.f32.mrb[43].mxu1  ;;  %1797 = vmatmul.mubr.bf16.gmra.mrb[36].mxu0 %v905_v8  ;;  %v888_v18 = vmax.f32 %v840_v11, 0.0 }
 0x1ff   : > { %v835_v17 = vadd.f32 %v2233_v35, %v834_v16  ;;  %v886_v20 = vmax.f32 %v832_v13, 0.0 }
 0x200   : > { %v889_v19 = vmax.f32 %v843_v15, 0.0 }
 0x201   : > { %v887_v21 = vmax.f32 %v835_v17, 0.0 }
 0x202   : > { %v907_v22 = vpack.c.bf16 %v889_v19, %v888_v18 }
 0x203   : > { %v906_v23 = vpack.c.bf16 %v887_v21, %v886_v20  ;;  %v1758_v24 = vpop.f32.mrb[44].mxu1 }
 0x204   : > { %v856_v25 = vadd.f32 %v1758_v24, %v2233_v35  ;;  %v847_v26 = vpop.f32.mrb[45].mxu1 }
 0x205   : > { %v848_v27 = vadd.f32 %v2233_v35, %v847_v26  ;;  %v1759_v28 = vpop.f32.mrb[46].mxu1  ;;  %1800 = vmatprep.mubr.bf16.mxu0 %v906_v23 }
 0x206   : > { %v859_v29 = vadd.f32 %v1759_v28, %v2233_v35  ;;  %v850_v30 = vpop.f32.mrb[47].mxu1  ;;  %1801 = vmatmul.mubr.bf16.gmra.mrb[40].mxu0 %v907_v22  ;;  %v892_v32 = vmax.f32 %v856_v25, 0.0 }
 0x207   : > { %v851_v31 = vadd.f32 %v2233_v35, %v850_v30  ;;  %v890_v34 = vmax.f32 %v848_v27, 0.0 }
 0x208   : > { %v893_v33 = vmax.f32 %v859_v29, 0.0 }
 0x209   : > { %v891_v36 = vmax.f32 %v851_v31, 0.0 }
 0x20a   : > { %v909_v37 = vpack.c.bf16 %v893_v33, %v892_v32 }
 0x20b   : > { %v908_v39 = vpack.c.bf16 %v891_v36, %v890_v34 }
 0x20d   : > { %1804 = vmatprep.mubr.bf16.mxu0 %v908_v39 }
 0x20e   : > { %1805 = vmatmul.mubr.bf16.gmra.mrb[44].mxu0 %v909_v37 }
 0x2a9   : > { %v1778_v41 = vpop.f32.mrb[16].mxu0 }
 0x2aa   : > { %v1024_v42 = vadd.f32 %v1778_v41, %v2271_v40  ;;  %v1015_v43 = vpop.f32.mrb[17].mxu0 }
 0x2ab   : > { %v1016_v35 = vadd.f32 %v2271_v40, %v1015_v43  ;;  %v1779_v44 = vpop.f32.mrb[18].mxu0 }
 0x2ac   : > { %v1144_v45 = vmax.f32 %v1024_v42, 0.0  ;;  %v1027_v46 = vadd.f32 %v1779_v44, %v2271_v40  ;;  %v1018_v47 = vpop.f32.mrb[19].mxu0 }
 0x2ad   : > { %v1142_v48 = vmax.f32 %v1016_v35, 0.0  ;;  %v1019_v49 = vadd.f32 %v2271_v40, %v1018_v47 }
 0x2ae   : > { %1177 = vst.msk [vmem:[%s2277_s24 + $0x10] sm:$0xff] %vm1174_vm1, %v1144_v45  ;;  %v1145_v50 = vmax.f32 %v1027_v46, 0.0 }
 0x2af   : > { %1175 = vst.msk [vmem:[%s2277_s24] sm:$0xff] %vm1174_vm1, %v1142_v48  ;;  %v1143_v51 = vmax.f32 %v1019_v49, 0.0 }
 0x2b0   : > { %1178 = vst.msk [vmem:[%s2277_s24 + $0x18] sm:$0xff] %vm1174_vm1, %v1145_v50 }
 0x2b1   : > { %1176 = vst.msk [vmem:[%s2277_s24 + $0x8] sm:$0xff] %vm1174_vm1, %v1143_v51  ;;  %v1782_v0 = vpop.f32.mrb[20].mxu0 }
 0x2b2   : > { %v1040_v38 = vadd.f32 %v1782_v0, %v2271_v40  ;;  %v1031_v52 = vpop.f32.mrb[21].mxu0 }
 0x2b3   : > { %v1032_v53 = vadd.f32 %v2271_v40, %v1031_v52  ;;  %v1783_v54 = vpop.f32.mrb[22].mxu0 }
 0x2b4   : > { %v1148_v55 = vmax.f32 %v1040_v38, 0.0  ;;  %v1043_v56 = vadd.f32 %v1783_v54, %v2271_v40  ;;  %v1034_v57 = vpop.f32.mrb[23].mxu0 }
 0x2b5   : > { %v1146_v58 = vmax.f32 %v1032_v53, 0.0  ;;  %v1035_v59 = vadd.f32 %v2271_v40, %v1034_v57 }
 0x2b6   : > { %1181 = vst.msk [vmem:[%s2277_s24 + $0x30] sm:$0xff] %vm1174_vm1, %v1148_v55  ;;  %v1149_v60 = vmax.f32 %v1043_v56, 0.0 }
 0x2b7   : > { %1179 = vst.msk [vmem:[%s2277_s24 + $0x20] sm:$0xff] %vm1174_vm1, %v1146_v58  ;;  %v1147_v61 = vmax.f32 %v1035_v59, 0.0 }
 0x2b8   : > { %1182 = vst.msk [vmem:[%s2277_s24 + $0x38] sm:$0xff] %vm1174_vm1, %v1149_v60 }
 0x2b9   : > { %1180 = vst.msk [vmem:[%s2277_s24 + $0x28] sm:$0xff] %vm1174_vm1, %v1147_v61  ;;  %v1786_v62 = vpop.f32.mrb[24].mxu0 }
 0x2ba   : > { %v1056_v63 = vadd.f32 %v1786_v62, %v2271_v40  ;;  %v1047_v1 = vpop.f32.mrb[25].mxu0 }
 0x2bb   : > { %v1048_v2 = vadd.f32 %v2271_v40, %v1047_v1  ;;  %v1787_v3 = vpop.f32.mrb[26].mxu0 }
 0x2bc   : > { %v1152_v4 = vmax.f32 %v1056_v63, 0.0  ;;  %v1059_v5 = vadd.f32 %v1787_v3, %v2271_v40  ;;  %v1050_v6 = vpop.f32.mrb[27].mxu0 }
 0x2bd   : > { %v1150_v7 = vmax.f32 %v1048_v2, 0.0  ;;  %v1051_v8 = vadd.f32 %v2271_v40, %v1050_v6 }
 0x2be   : > { %1185 = vst.msk [vmem:[%s2277_s24 + $0x50] sm:$0xff] %vm1174_vm1, %v1152_v4  ;;  %v1153_v9 = vmax.f32 %v1059_v5, 0.0 }
 0x2bf   : > { %1183 = vst.msk [vmem:[%s2277_s24 + $0x40] sm:$0xff] %vm1174_vm1, %v1150_v7  ;;  %v1151_v10 = vmax.f32 %v1051_v8, 0.0 }
 0x2c0   : > { %1186 = vst.msk [vmem:[%s2277_s24 + $0x58] sm:$0xff] %vm1174_vm1, %v1153_v9 }
 0x2c1   : > { %1184 = vst.msk [vmem:[%s2277_s24 + $0x48] sm:$0xff] %vm1174_vm1, %v1151_v10  ;;  %v1790_v11 = vpop.f32.mrb[28].mxu0 }
 0x2c2   : > { %v1072_v12 = vadd.f32 %v1790_v11, %v2271_v40  ;;  %v1063_v13 = vpop.f32.mrb[29].mxu0 }
 0x2c3   : > { %v1064_v14 = vadd.f32 %v2271_v40, %v1063_v13  ;;  %v1791_v15 = vpop.f32.mrb[30].mxu0 }
 0x2c4   : > { %v1156_v16 = vmax.f32 %v1072_v12, 0.0  ;;  %v1075_v17 = vadd.f32 %v1791_v15, %v2271_v40  ;;  %v1066_v18 = vpop.f32.mrb[31].mxu0 }
 0x2c5   : > { %v1154_v19 = vmax.f32 %v1064_v14, 0.0  ;;  %v1067_v20 = vadd.f32 %v2271_v40, %v1066_v18 }
 0x2c6   : > { %1189 = vst.msk [vmem:[%s2277_s24 + $0x70] sm:$0xff] %vm1174_vm1, %v1156_v16  ;;  %v1157_v21 = vmax.f32 %v1075_v17, 0.0 }
 0x2c7   : > { %1187 = vst.msk [vmem:[%s2277_s24 + $0x60] sm:$0xff] %vm1174_vm1, %v1154_v19  ;;  %v1155_v22 = vmax.f32 %v1067_v20, 0.0 }
 0x2c8   : > { %1190 = vst.msk [vmem:[%s2277_s24 + $0x78] sm:$0xff] %vm1174_vm1, %v1157_v21 }
 0x2c9   : > { %1188 = vst.msk [vmem:[%s2277_s24 + $0x68] sm:$0xff] %vm1174_vm1, %v1155_v22  ;;  %v1794_v23 = vpop.f32.mrb[32].mxu0 }
 0x2ca   : > { %v1088_v24 = vadd.f32 %v1794_v23, %v2271_v40  ;;  %v1079_v25 = vpop.f32.mrb[33].mxu0 }
 0x2cb   : > { %v1080_v26 = vadd.f32 %v2271_v40, %v1079_v25  ;;  %v1795_v27 = vpop.f32.mrb[34].mxu0 }
 0x2cc   : > { %v1160_v28 = vmax.f32 %v1088_v24, 0.0  ;;  %v1091_v29 = vadd.f32 %v1795_v27, %v2271_v40  ;;  %v1082_v30 = vpop.f32.mrb[35].mxu0 }
 0x2cd   : > { %v1158_v31 = vmax.f32 %v1080_v26, 0.0  ;;  %v1083_v32 = vadd.f32 %v2271_v40, %v1082_v30 }
 0x2ce   : > { %1193 = vst.msk [vmem:[%s2277_s24 + $0x90] sm:$0xff] %vm1174_vm1, %v1160_v28  ;;  %v1161_v33 = vmax.f32 %v1091_v29, 0.0 }
 0x2cf   : > { %1191 = vst.msk [vmem:[%s2277_s24 + $0x80] sm:$0xff] %vm1174_vm1, %v1158_v31  ;;  %v1159_v34 = vmax.f32 %v1083_v32, 0.0 }
 0x2d0   : > { %1194 = vst.msk [vmem:[%s2277_s24 + $0x98] sm:$0xff] %vm1174_vm1, %v1161_v33 }
 0x2d1   : > { %1192 = vst.msk [vmem:[%s2277_s24 + $0x88] sm:$0xff] %vm1174_vm1, %v1159_v34  ;;  %v1798_v36 = vpop.f32.mrb[36].mxu0 }
 0x2d2   : > { %v1104_v37 = vadd.f32 %v1798_v36, %v2271_v40  ;;  %v1095_v39 = vpop.f32.mrb[37].mxu0 }
 0x2d3   : > { %v1096_v41 = vadd.f32 %v2271_v40, %v1095_v39  ;;  %v1799_v42 = vpop.f32.mrb[38].mxu0 }
 0x2d4   : > { %v1164_v43 = vmax.f32 %v1104_v37, 0.0  ;;  %v1107_v35 = vadd.f32 %v1799_v42, %v2271_v40  ;;  %v1098_v44 = vpop.f32.mrb[39].mxu0 }
 0x2d5   : > { %v1162_v45 = vmax.f32 %v1096_v41, 0.0  ;;  %v1099_v46 = vadd.f32 %v2271_v40, %v1098_v44 }
 0x2d6   : > { %1197 = vst.msk [vmem:[%s2277_s24 + $0xb0] sm:$0xff] %vm1174_vm1, %v1164_v43  ;;  %v1165_v47 = vmax.f32 %v1107_v35, 0.0 }
 0x2d7   : > { %1195 = vst.msk [vmem:[%s2277_s24 + $0xa0] sm:$0xff] %vm1174_vm1, %v1162_v45  ;;  %v1163_v48 = vmax.f32 %v1099_v46, 0.0 }
 0x2d8   : > { %1198 = vst.msk [vmem:[%s2277_s24 + $0xb8] sm:$0xff] %vm1174_vm1, %v1165_v47 }
 0x2d9   : > { %1196 = vst.msk [vmem:[%s2277_s24 + $0xa8] sm:$0xff] %vm1174_vm1, %v1163_v48  ;;  %v1802_v49 = vpop.f32.mrb[40].mxu0 }
 0x2da   : > { %v1120_v50 = vadd.f32 %v1802_v49, %v2271_v40  ;;  %v1111_v51 = vpop.f32.mrb[41].mxu0 }
 0x2db   : > { %v1112_v0 = vadd.f32 %v2271_v40, %v1111_v51  ;;  %v1803_v38 = vpop.f32.mrb[42].mxu0 }
 0x2dc   : > { %v1168_v52 = vmax.f32 %v1120_v50, 0.0  ;;  %v1123_v53 = vadd.f32 %v1803_v38, %v2271_v40  ;;  %v1114_v54 = vpop.f32.mrb[43].mxu0 }
 0x2dd   : > { %v1166_v55 = vmax.f32 %v1112_v0, 0.0  ;;  %v1115_v56 = vadd.f32 %v2271_v40, %v1114_v54 }
 0x2de   : > { %1201 = vst.msk [vmem:[%s2277_s24 + $0xd0] sm:$0xff] %vm1174_vm1, %v1168_v52  ;;  %v1169_v57 = vmax.f32 %v1123_v53, 0.0 }
 0x2df   : > { %1199 = vst.msk [vmem:[%s2277_s24 + $0xc0] sm:$0xff] %vm1174_vm1, %v1166_v55  ;;  %v1167_v58 = vmax.f32 %v1115_v56, 0.0 }
 0x2e0   : > { %1202 = vst.msk [vmem:[%s2277_s24 + $0xd8] sm:$0xff] %vm1174_vm1, %v1169_v57 }
 0x2e1   : > { %1200 = vst.msk [vmem:[%s2277_s24 + $0xc8] sm:$0xff] %vm1174_vm1, %v1167_v58  ;;  %v1806_v59 = vpop.f32.mrb[44].mxu0 }
 0x2e2   : > { %v1136_v60 = vadd.f32 %v1806_v59, %v2271_v40  ;;  %v1127_v61 = vpop.f32.mrb[45].mxu0 }
 0x2e3   : > { %v1128_v62 = vadd.f32 %v2271_v40, %v1127_v61  ;;  %v1807_v63 = vpop.f32.mrb[46].mxu0  ;;  %1213 = sbr.rel (!%p2071_p4) target bundleno = 802 (0x322), region = 52 }
 0x2e4   : > { %v1172_v1 = vmax.f32 %v1136_v60, 0.0  ;;  %v1139_v2 = vadd.f32 %v1807_v63, %v2271_v40  ;;  %v1130_v3 = vpop.f32.mrb[47].mxu0 }
 0x2e5   : > { %v1170_v4 = vmax.f32 %v1128_v62, 0.0  ;;  %v1131_v5 = vadd.f32 %v2271_v40, %v1130_v3 }
 0x2e6   : > { %1205 = vst.msk [vmem:[%s2277_s24 + $0xf0] sm:$0xff] %vm1174_vm1, %v1172_v1  ;;  %v1173_v6 = vmax.f32 %v1139_v2, 0.0 }
 0x2e7   : > { %1203 = vst.msk [vmem:[%s2277_s24 + $0xe0] sm:$0xff] %vm1174_vm1, %v1170_v4  ;;  %v1171_v7 = vmax.f32 %v1131_v5, 0.0 }
 0x2e8   : > { %1206 = vst.msk [vmem:[%s2277_s24 + $0xf8] sm:$0xff] %vm1174_vm1, %v1173_v6 }
 0x2e9   : > { %1204 = vst.msk [vmem:[%s2277_s24 + $0xe8] sm:$0xff] %vm1174_vm1, %v1171_v7 }
 0x2ea   : > { %s2528_s11 = smov (!%p1216_p8, %s1215_s11), 32 }
 0x2eb   : > { %s1592_s17 = sshll.u32 %s2528_s11, 7 }
 0x2ec   : > { %p1595_p9 = scmp.eq.s32.totalorder %s1592_s17, 0 }
 0x2ed   : > { %s2384_s18 = sshrl.u32 (!%p1595_p9), %s2528_s11, 5 }
 0x2ee   : > { %1224 = sbr.rel (%p1595_p9) target bundleno = 802 (0x322), region = 56  ;;  %p1596_p10 = scmp.le.s32.totalorder (!%p1595_p9), %s2384_s18, 0 }
 0x2f5   : > { %1502 = sbr.rel (%p1596_p10) target bundleno = 781 (0x30d), region = 132  ;;  %s2519_s27 = smov (!%p1596_p10), %s2378_s16 }
 0x2f6   : > { %s2520_s9 = smov (!%p1596_p10), %s2277_s24  ;;  %s2393_s12 = smov (!%p1596_p10), 0  }
 0x2f7   : > { %s2395_s19 = smov (!%p1596_p10), 0  }
 0x2fc LB: >> { %v1348_v40 = vld [vmem:[%s1980_s9] sm:$0xff]  ;;  %v1350_v8 = vld [vmem:[%s1980_s9 + $0x8] sm:$0xff]  ;;  %v1352_v9 = vld [vmem:[%s1980_s9 + $0x10] sm:$0xff]  ;;  %s1412_s20 = sadd.s32 1, %s1984_s12  ;;  %s1342_s19 = sadd.s32 1, %s1988_s19   ;;  %s1988_s19 = sphi %s2395_s19, %s1342_s19   ;;  %s1984_s12 = sphi %s2393_s12, %s2523_s12   ;;  %s1980_s9 = sphi %s2520_s9, %s2522_s9   ;;  %s1976_s27 = sphi %s2519_s27, %s2521_s27  }
 0x2fd   : >> { %1349 = vst [vmem:[%s1976_s27] sm:$0xff] %v1348_v40  ;;  %1351 = vst [vmem:[%s1976_s27 + $0x8] sm:$0xff] %v1350_v8  ;;  %v1354_v10 = vld [vmem:[%s1980_s9 + $0x18] sm:$0xff]  ;;  %v1356_v11 = vld [vmem:[%s1980_s9 + $0x20] sm:$0xff]  ;;  %p1413_p11 = scmp.ge.s32.totalorder %s1412_s20, %s2384_s18  ;;  %p1341_p12 = scmp.ge.s32.totalorder %s1342_s19, %s2384_s18 }
 0x2fe   : >> { %1353 = vst [vmem:[%s1976_s27 + $0x10] sm:$0xff] %v1352_v9  ;;  %v1358_v12 = vld [vmem:[%s1980_s9 + $0x28] sm:$0xff]  ;;  %1355 = vst [vmem:[%s1976_s27 + $0x18] sm:$0xff] %v1354_v10  ;;  %v1360_v13 = vld [vmem:[%s1980_s9 + $0x30] sm:$0xff] }
 0x2ff   : >> { %1357 = vst [vmem:[%s1976_s27 + $0x20] sm:$0xff] %v1356_v11  ;;  %1359 = vst [vmem:[%s1976_s27 + $0x28] sm:$0xff] %v1358_v12  ;;  %v1362_v14 = vld [vmem:[%s1980_s9 + $0x38] sm:$0xff]  ;;  %v1364_v15 = vld [vmem:[%s1980_s9 + $0x40] sm:$0xff]  ;;  %s2530_s20 = smov (%p1413_p11, %s1412_s20), 0 }
 0x300   : >> { %1361 = vst [vmem:[%s1976_s27 + $0x30] sm:$0xff] %v1360_v13  ;;  %1363 = vst [vmem:[%s1976_s27 + $0x38] sm:$0xff] %v1362_v14  ;;  %v1366_v16 = vld [vmem:[%s1980_s9 + $0x48] sm:$0xff]  ;;  %v1368_v17 = vld [vmem:[%s1980_s9 + $0x50] sm:$0xff]  ;;  %s1597_s21 = sshll.u32 %s2530_s20, 8  ;;  %s2523_s12 = smov %s2530_s20 }
 0x301   : >> { %1365 = vst [vmem:[%s1976_s27 + $0x40] sm:$0xff] %v1364_v15  ;;  %v1370_v18 = vld [vmem:[%s1980_s9 + $0x58] sm:$0xff]  ;;  %1367 = vst [vmem:[%s1976_s27 + $0x48] sm:$0xff] %v1366_v16  ;;  %v1372_v19 = vld [vmem:[%s1980_s9 + $0x60] sm:$0xff]  ;;  %s2451_s22 = scalar_lea.vmem %s2277_s24, %s1597_s21 [#allocation2]   ;;  %s1418_s23 = scalar_lea.vmem %s2378_s16, %s1597_s21  }
 0x302   : >> { %1369 = vst [vmem:[%s1976_s27 + $0x50] sm:$0xff] %v1368_v17  ;;  %1371 = vst [vmem:[%s1976_s27 + $0x58] sm:$0xff] %v1370_v18  ;;  %v1374_v20 = vld [vmem:[%s1980_s9 + $0x68] sm:$0xff]  ;;  %v1376_v21 = vld [vmem:[%s1980_s9 + $0x70] sm:$0xff] }
 0x303   : >> { %1373 = vst [vmem:[%s1976_s27 + $0x60] sm:$0xff] %v1372_v19  ;;  %1375 = vst [vmem:[%s1976_s27 + $0x68] sm:$0xff] %v1374_v20  ;;  %v1378_v22 = vld [vmem:[%s1980_s9 + $0x78] sm:$0xff]  ;;  %v1380_v23 = vld [vmem:[%s1980_s9 + $0x80] sm:$0xff] }
 0x304   : >> { %1377 = vst [vmem:[%s1976_s27 + $0x70] sm:$0xff] %v1376_v21  ;;  %v1382_v24 = vld [vmem:[%s1980_s9 + $0x88] sm:$0xff]  ;;  %1379 = vst [vmem:[%s1976_s27 + $0x78] sm:$0xff] %v1378_v22  ;;  %v1384_v25 = vld [vmem:[%s1980_s9 + $0x90] sm:$0xff] }
 0x305   : >> { %1381 = vst [vmem:[%s1976_s27 + $0x80] sm:$0xff] %v1380_v23  ;;  %1383 = vst [vmem:[%s1976_s27 + $0x88] sm:$0xff] %v1382_v24  ;;  %v1386_v26 = vld [vmem:[%s1980_s9 + $0x98] sm:$0xff]  ;;  %v1388_v27 = vld [vmem:[%s1980_s9 + $0xa0] sm:$0xff] }
 0x306   : >> { %1385 = vst [vmem:[%s1976_s27 + $0x90] sm:$0xff] %v1384_v25  ;;  %1387 = vst [vmem:[%s1976_s27 + $0x98] sm:$0xff] %v1386_v26  ;;  %v1390_v28 = vld [vmem:[%s1980_s9 + $0xa8] sm:$0xff]  ;;  %v1392_v29 = vld [vmem:[%s1980_s9 + $0xb0] sm:$0xff]  ;;  %1344 = sbr.rel (!%p1341_p12) target bundleno = 764 (0x2fc), region = 138 }
 0x307   : >> { %1389 = vst [vmem:[%s1976_s27 + $0xa0] sm:$0xff] %v1388_v27  ;;  %v1394_v30 = vld [vmem:[%s1980_s9 + $0xb8] sm:$0xff]  ;;  %1391 = vst [vmem:[%s1976_s27 + $0xa8] sm:$0xff] %v1390_v28  ;;  %v1396_v31 = vld [vmem:[%s1980_s9 + $0xc0] sm:$0xff] }
 0x308   : >> { %1393 = vst [vmem:[%s1976_s27 + $0xb0] sm:$0xff] %v1392_v29  ;;  %1395 = vst [vmem:[%s1976_s27 + $0xb8] sm:$0xff] %v1394_v30  ;;  %v1398_v32 = vld [vmem:[%s1980_s9 + $0xc8] sm:$0xff]  ;;  %v1400_v33 = vld [vmem:[%s1980_s9 + $0xd0] sm:$0xff] }
 0x309   : >> { %1397 = vst [vmem:[%s1976_s27 + $0xc0] sm:$0xff] %v1396_v31  ;;  %1399 = vst [vmem:[%s1976_s27 + $0xc8] sm:$0xff] %v1398_v32  ;;  %v1402_v34 = vld [vmem:[%s1980_s9 + $0xd8] sm:$0xff]  ;;  %v1404_v36 = vld [vmem:[%s1980_s9 + $0xe0] sm:$0xff] }
 0x30a   : >> { %1401 = vst [vmem:[%s1976_s27 + $0xd0] sm:$0xff] %v1400_v33  ;;  %v1406_v37 = vld [vmem:[%s1980_s9 + $0xe8] sm:$0xff]  ;;  %1403 = vst [vmem:[%s1976_s27 + $0xd8] sm:$0xff] %v1402_v34  ;;  %v1408_v39 = vld [vmem:[%s1980_s9 + $0xf0] sm:$0xff] }
 0x30b   : >> { %1405 = vst [vmem:[%s1976_s27 + $0xe0] sm:$0xff] %v1404_v36  ;;  %1407 = vst [vmem:[%s1976_s27 + $0xe8] sm:$0xff] %v1406_v37  ;;  %v1410_v41 = vld [vmem:[%s1980_s9 + $0xf8] sm:$0xff]  ;;  %s2522_s9 = smov %s2451_s22 }
 0x30c   : >> { %1409 = vst [vmem:[%s1976_s27 + $0xf0] sm:$0xff] %v1408_v39  ;;  %1411 = vst [vmem:[%s1976_s27 + $0xf8] sm:$0xff] %v1410_v41  ;;  %s2521_s27 = smov %s1418_s23 }
 0x30d PF: > { %s2492_s26 = sand.u32 31, %s2528_s11   ;;  %s1608_s29 = sshll.u32 %s2384_s18, 8 }
 0x30e   : > { %s1423_s30 = scalar_lea.vmem %s2277_s24, %s1608_s29 [#allocation2]   ;;  %s1425_s10 = scalar_lea.vmem %s2378_s16, %s1608_s29  }
 0x30f   : > { %p1602_p13 = scmp.le.s32.totalorder %s2492_s26, 0 }
 0x310   : > { %s1990_s13 = smov (!%p1602_p13), %s1425_s10   ;;  %s1994_s14 = smov (!%p1602_p13), %s1423_s30  }
 0x311   : > { %1516 = sbr.rel (%p1602_p13) target bundleno = 802 (0x322), region = 143  ;;  %s1998_s15 = smov (!%p1602_p13), 0  }
 0x312   : > { %s2002_s17 = smov (!%p1602_p13), 0  }
 0x318 LB: >> { %v1435_v42 = vld [vmem:[%s1996_s14] sm:$0xff]  ;;  %s1437_s11 = sadd.s32 1, %s2000_s15  ;;  %s1429_s17 = sadd.s32 1, %s2004_s17   ;;  %s2004_s17 = sphi %s2002_s17, %s1429_s17   ;;  %s2000_s15 = sphi %s1998_s15, %s1999_s15   ;;  %s1996_s14 = sphi %s1994_s14, %s1442_s14   ;;  %s1992_s13 = sphi %s1990_s13, %s1443_s13  }
 0x319   : >> { %1436 = vst [vmem:[%s1992_s13] sm:$0xff] %v1435_v42  ;;  %p1438_p0 = scmp.ge.s32.totalorder %s1437_s11, %s2492_s26  ;;  %p1428_p1 = scmp.ge.s32.totalorder %s1429_s17, %s2492_s26 }
 0x31b   : >> { %s2532_s11 = smov (%p1438_p0, %s1437_s11), 0  ;;  %1431 = sbr.rel (!%p1428_p1) target bundleno = 792 (0x318), region = 149 }
 0x31c   : >> { %s1603_s24 = sshll.u32 %s2532_s11, 3  ;;  %s1999_s15 = smov %s2532_s11  }
 0x31d   : >> { %s1442_s14 = scalar_lea.vmem %s1423_s30, %s1603_s24 [#allocation2]   ;;  %s1443_s13 = scalar_lea.vmem %s1425_s10, %s1603_s24  }
 0x322 PF: > { %p14_p2 = scmp.ge.s32.totalorder %s2061_s28, 4   ;;  %s2524_s24 = smov %s1968_s25 }
 0x323   : > { %s2525_s25 = smov %s2069_s8  ;;  %s2526_s26 = smov %s2061_s28 }
 0x324   :  { %16 = sbr.rel (!%p14_p2) target bundleno = 2 (0x2), region = 160 }

</bundles_post_ra>
